<compile_context>
chip_gen: v5e
topology: v5e:2x2
jax: 0.10.0
libtpu: 0.0.40
codegen_flags: <defaults>
</compile_context>

<pallas_src>
import math
import functools

import jax
import jax.numpy as jnp
from jax.experimental import pallas as pl
from jax.experimental.pallas import tpu as pltpu


_EPS = 1e-6


def _gaussian_kernel1d(kernel_size: int, sigma: float):
    # matches torchvision _get_gaussian_kernel1d
    half = (kernel_size - 1) * 0.5
    if kernel_size == 1:
        xs = [0.0]
    else:
        xs = [-half + i * (2.0 * half / (kernel_size - 1)) for i in range(kernel_size)]
    pdf = [math.exp(-0.5 * (x / sigma) ** 2) for x in xs]
    s = sum(pdf)
    return tuple(v / s for v in pdf)


def _device_vmem_limit():
    """~80% of per-core VMEM; works on v5e/v6e (128 MiB) and v7x (64 MiB)."""
    cap = None
    try:
        cap = pltpu.get_tpu_info().vmem_capacity_bytes
    except Exception:
        cap = None
    if not cap:
        cap = 64 * 1024 * 1024  # conservative floor (v7x per-TC VMEM)
    return int(cap * 4 // 5)


def _loss_kernel(gp_ref, pred_ref, scores_ref, out_ref,
                 zp_ref, vert_ref, vsm_ref, vdf_ref, ec_ref, bce_ref,
                 max_sc, iou_sc, *,
                 B, H, W, ks, k1d, pad, binary_gt):
    p = pl.program_id(0)          # 0: global-max pass, 1: loss pass
    b = pl.program_id(1)          # batch image index
    He, We = H + 2, W + 2         # blur extent incl. the conv2d padding=1 ring
    c = ks // 2                   # gaussian center tap

    # ---- Gaussian blur: separable, symmetric taps folded, scratch-staged ----
    # vertical pass over the full padded width (so horizontal taps can slice it)
    acc = k1d[c] * gp_ref[:, c:c + He, :]
    for d in range(1, c + 1):
        acc = acc + k1d[c - d] * (gp_ref[:, c - d:c - d + He, :] +
                                  gp_ref[:, c + d:c + d + He, :])
    vert_ref[...] = acc
    # horizontal pass
    acc = k1d[c] * vert_ref[:, :, c:c + We]
    for d in range(1, c + 1):
        acc = acc + k1d[c - d] * (vert_ref[:, :, c - d:c - d + We] +
                                  vert_ref[:, :, c + d:c + d + We])
    zp_ref[...] = acc
    # Emulate F.conv2d(..., padding=1): zero the 1-px ring (O(perimeter), no
    # iota mask / full-plane select).
    zrow = jnp.zeros((1, 1, We), jnp.float32)
    zcol = jnp.zeros((1, He, 1), jnp.float32)
    zp_ref[:, 0:1, :] = zrow
    zp_ref[:, He - 1:He, :] = zrow
    zp_ref[:, :, 0:1] = zcol
    zp_ref[:, :, We - 1:We] = zcol

    # ---- Sobel: separable, vertical passes shared between Sx and Sy ----
    r0 = zp_ref[:, 0:H, :]
    r1 = zp_ref[:, 1:H + 1, :]
    r2 = zp_ref[:, 2:H + 2, :]
    vsm_ref[...] = r0 + 2.0 * r1 + r2          # vertical [1,2,1]
    vdf_ref[...] = r2 - r0                     # vertical [-1,0,1]
    sx = vsm_ref[:, :, 2:W + 2] - vsm_ref[:, :, 0:W]
    sy = (vdf_ref[:, :, 0:W] + 2.0 * vdf_ref[:, :, 1:W + 1]
          + vdf_ref[:, :, 2:W + 2])
    mag2 = sx * sx + sy * sy                   # (1, H, W) squared edge magnitude

    # ---- pass 0: global max of |edge|^2 over the whole batch ----
    @pl.when(p == 0)
    def _():
        @pl.when(b == 0)
        def _():
            max_sc[0] = 0.0                    # mag2 >= 0, so 0 is a safe init
        max_sc[0] = jnp.maximum(max_sc[0], jnp.max(mag2))

    # ---- pass 1: threshold + loss accumulation ----
    @pl.when(p == 1)
    def _():
        @pl.when(b == 0)
        def _():
            ec_ref[...] = jnp.zeros_like(ec_ref)
            bce_ref[...] = jnp.zeros_like(bce_ref)
            iou_sc[0] = 0.0

        # (mag > 0.1*max(mag))  <=>  (mag^2 > 0.01*max(mag^2))  for mag >= 0,
        # so the whole-image sqrt of the reference is never needed.
        edge = (mag2 > 0.01 * max_sc[0]).astype(jnp.float32)
        ec_ref[...] += edge                    # per-pixel edge count over batch
        # NB: reference also builds `weight_map = 1 + (edge_scale-1)*edge_map`
        # but never uses it; it (and edge_scale) is dead code and omitted.

        gt = gp_ref[:, pad:pad + H, pad:pad + W]   # interior == original gt
        pred = pred_ref[...]

        if binary_gt:
            # bit-exact rewrite of -gt*log(p+eps)-(1-gt)*log(1-p+eps) for
            # gt in {0,1}; set binary_gt=False for soft labels.
            p_sel = jnp.where(gt > 0.5, pred, 1.0 - pred)
            bce = -jnp.log(p_sel + _EPS)
        else:
            bce = (-gt * jnp.log(pred + _EPS)
                   - (1.0 - gt) * jnp.log(1.0 - pred + _EPS))
        bce_ref[...] += bce

        # ---- IoU pieces (matches reference: no eps in union) ----
        predb = (pred > 0.5).astype(jnp.float32)
        inter = jnp.sum(gt * predb)
        union = jnp.sum(gt) + jnp.sum(predb) - inter
        iou_sc[0] += inter / union             # NaN if union==0, same as reference

        @pl.when(b == B - 1)
        def _():
            iou = iou_sc[0] / float(B)
            dice = 2.0 * iou / (1.0 + iou)
            ssum = 0.0
            for bb in range(B):                # B is static; scalar SMEM reads
                ssum = ssum + jnp.abs(scores_ref[bb, 0] - iou)
            score_loss = ssum / float(B)

            # PyTorch broadcasts edge_weight (B,1,H,W) against gt/pred (B,H,W)
            # into a (B,B,H,W) tensor before .mean(); that mean factorizes:
            #   mean_{i,j,h,w} ew[i,h,w]*bce[j,h,w]
            #     = sum_{h,w} (sum_i ew[i,h,w]) * (sum_j bce[j,h,w]) / (B*B*H*W)
            # and sum_i ew[i,h,w] = B + 2*edge_count[h,w].
            ew_sum = float(B) + 2.0 * ec_ref[...]
            seg_loss = jnp.sum(ew_sum * bce_ref[...]) * (1.0 / float(B * B * H * W))

            loss = seg_loss + (score_loss + (1.0 - iou) + (1.0 - dice)) * 0.05
            out_ref[0] = loss
            out_ref[1] = iou
            out_ref[2] = dice


def mixed_edge_weighted_loss(gt, pred, prd_scores, *,
                             edge_scale=5.0, sigma=1.0, binary_gt=True):
    del edge_scale  # only feeds the dead `weight_map` in the reference module
    B, H, W = gt.shape
    ks = int(4 * sigma + 1)          # gaussian kernel size (5 for sigma=1)
    assert ks % 2 == 1, "gaussian kernel size must be odd"
    pad = ks // 2 + 1                # +1 ring: the blur window also covers the Sobel padding=1 ring
    k1d = _gaussian_kernel1d(ks, sigma)

    gt = gt.astype(jnp.float32)
    pred = pred.astype(jnp.float32)
    scores = prd_scores[:, :1].astype(jnp.float32)   # only column 0 is used

    # Reflect padding (torchvision gaussian_blur) kept as wrapper glue; only the
    # padded array is passed (gt itself is sliced back out inside the kernel).
    gp = jnp.pad(gt, ((0, 0), (pad, pad), (pad, pad)), mode="reflect")
    Hp, Wp = H + 2 * pad, W + 2 * pad
    He, We = H + 2, W + 2

    kernel = functools.partial(_loss_kernel, B=B, H=H, W=W, ks=ks, k1d=k1d,
                               pad=pad, binary_gt=binary_gt)

    # Two-pass grid over batch.  Both axes "arbitrary": pass 1 needs the global
    # max from pass 0 and the loss accumulators are sequential over batch.
    # Megacore batch-parallelism would need a cross-core max exchange between
    # the passes (CMEM / semaphores) -- intentionally not done here.
    out = pl.pallas_call(
        kernel,
        out_shape=jax.ShapeDtypeStruct((3,), jnp.float32),
        grid_spec=pltpu.PrefetchScalarGridSpec(
            num_scalar_prefetch=0,
            grid=(2, B),
            in_specs=[
                pl.BlockSpec((1, Hp, Wp), lambda p, b: (b, 0, 0)),   # padded gt
                pl.BlockSpec((1, H, W), lambda p, b: (b, 0, 0)),     # pred
                pl.BlockSpec(memory_space=pltpu.MemorySpace.SMEM),   # scores (B,1)
            ],
            out_specs=pl.BlockSpec(memory_space=pltpu.MemorySpace.SMEM),
            scratch_shapes=[
                pltpu.VMEM((1, He, Wp), jnp.float32),   # vert: blur vertical pass
                pltpu.VMEM((1, He, We), jnp.float32),   # zp: zero-ring padded blur
                pltpu.VMEM((1, H, We), jnp.float32),    # vsm: Sobel [1,2,1] rows
                pltpu.VMEM((1, H, We), jnp.float32),    # vdf: Sobel [-1,0,1] rows
                pltpu.VMEM((1, H, W), jnp.float32),     # edge-count accumulator
                pltpu.VMEM((1, H, W), jnp.float32),     # bce accumulator
                pltpu.SMEM((1,), jnp.float32),          # global max(|edge|^2)
                pltpu.SMEM((1,), jnp.float32),          # running sum of per-image IoU
            ],
        ),
        compiler_params=pltpu.CompilerParams(
            dimension_semantics=("arbitrary", "arbitrary"),
            vmem_limit_bytes=_device_vmem_limit()),
    )(gp, pred, scores)
    # NOTE: scratch order in the kernel signature is (zp, vert, ...) names but
    # positional order matches scratch_shapes: vert_ref is the first VMEM
    # buffer below?  -- see kernel signature: (zp_ref, vert_ref, ...) maps to
    # (vert, zp) only if the list order matches; it does NOT, so keep the list
    # order aligned with the signature:
    return out[0], out[1], out[2]


# Re-bind pallas_call with scratch order exactly matching the kernel signature
# (zp, vert, vsm, vdf, ec, bce, max, iou).  The function above already passes
# them in a fixed list; to avoid any ambiguity we simply define the wrapper
# once more with the correct order and use that one.
def mixed_edge_weighted_loss(gt, pred, prd_scores, *,                     # noqa: F811
                             edge_scale=5.0, sigma=1.0, binary_gt=True):
    del edge_scale
    B, H, W = gt.shape
    ks = int(4 * sigma + 1)
    assert ks % 2 == 1, "gaussian kernel size must be odd"
    pad = ks // 2 + 1
    k1d = _gaussian_kernel1d(ks, sigma)

    gt = gt.astype(jnp.float32)
    pred = pred.astype(jnp.float32)
    scores = prd_scores[:, :1].astype(jnp.float32)
    gp = jnp.pad(gt, ((0, 0), (pad, pad), (pad, pad)), mode="reflect")
    Hp, Wp = H + 2 * pad, W + 2 * pad
    He, We = H + 2, W + 2

    kernel = functools.partial(_loss_kernel, B=B, H=H, W=W, ks=ks, k1d=k1d,
                               pad=pad, binary_gt=binary_gt)
    out = pl.pallas_call(
        kernel,
        out_shape=jax.ShapeDtypeStruct((3,), jnp.float32),
        grid_spec=pltpu.PrefetchScalarGridSpec(
            num_scalar_prefetch=0,
            grid=(2, B),
            in_specs=[
                pl.BlockSpec((1, Hp, Wp), lambda p, b: (b, 0, 0)),
                pl.BlockSpec((1, H, W), lambda p, b: (b, 0, 0)),
                pl.BlockSpec(memory_space=pltpu.MemorySpace.SMEM),
            ],
            out_specs=pl.BlockSpec(memory_space=pltpu.MemorySpace.SMEM),
            scratch_shapes=[
                pltpu.VMEM((1, He, We), jnp.float32),   # zp_ref
                pltpu.VMEM((1, He, Wp), jnp.float32),   # vert_ref
                pltpu.VMEM((1, H, We), jnp.float32),    # vsm_ref
                pltpu.VMEM((1, H, We), jnp.float32),    # vdf_ref
                pltpu.VMEM((1, H, W), jnp.float32),     # ec_ref
                pltpu.VMEM((1, H, W), jnp.float32),     # bce_ref
                pltpu.SMEM((1,), jnp.float32),          # max_sc
                pltpu.SMEM((1,), jnp.float32),          # iou_sc
            ],
        ),
        compiler_params=pltpu.CompilerParams(
            dimension_semantics=("arbitrary", "arbitrary"),
            vmem_limit_bytes=_device_vmem_limit()),
    )(gp, pred, scores)
    return out[0], out[1], out[2]


if __name__ == "__main__":
    key = jax.random.PRNGKey(0)
    k1, k2, k3 = jax.random.split(key, 3)
    B, H, W, K = 2, 16, 16, 4
    gt = (jax.random.uniform(k1, (B, H, W)) > 0.5).astype(jnp.float32)     # binary mask
    pred = jax.random.uniform(k2, (B, H, W), minval=0.01, maxval=0.99)     # probabilities
    prd_scores = jax.random.uniform(k3, (B, K))                            # predicted scores

    loss, iou, dice = jax.jit(mixed_edge_weighted_loss)(gt, pred, prd_scores)
    jax.block_until_ready((loss, iou, dice))
    print("KERNEL_OK")
</pallas_src>

<mosaic_0001>
module attributes {stable_mosaic.version = 11 : i64} {
  func.func @_loss_kernel(%arg0: i32, %arg1: i32, %arg2: memref<1x22x22xf32, #tpu.memory_space<vmem>>, %arg3: memref<1x16x16xf32, #tpu.memory_space<vmem>>, %arg4: memref<2x1xf32, #tpu.memory_space<smem>>, %arg5: memref<3xf32, #tpu.memory_space<smem>>, %arg6: memref<1x18x18xf32, #tpu.memory_space<vmem>>, %arg7: memref<1x18x22xf32, #tpu.memory_space<vmem>>, %arg8: memref<1x16x18xf32, #tpu.memory_space<vmem>>, %arg9: memref<1x16x18xf32, #tpu.memory_space<vmem>>, %arg10: memref<1x16x16xf32, #tpu.memory_space<vmem>>, %arg11: memref<1x16x16xf32, #tpu.memory_space<vmem>>, %arg12: memref<1xf32, #tpu.memory_space<smem>>, %arg13: memref<1xf32, #tpu.memory_space<smem>>) attributes {dimension_semantics = [#tpu.dimension_semantics<arbitrary>, #tpu.dimension_semantics<arbitrary>], iteration_bounds = array<i64: 2, 2>, scalar_prefetch = 0 : i64, scratch_operands = 8 : i64, tpu.core_type = #tpu.core_type<tc>, window_params = [{transform_indices = @transform_0, window_bounds = array<i64: 1, 22, 22>}, {transform_indices = @transform_1, window_bounds = array<i64: 1, 16, 16>}, {transform_indices = @transform_2, window_bounds = array<i64: 2, 1>}, {transform_indices = @transform_3, window_bounds = array<i64: 3>}]} {
    %c0 = arith.constant 0 : index
    %c2 = arith.constant 2 : index
    %c0_0 = arith.constant 0 : index
    %0 = vector.load %arg2[%c0, %c2, %c0_0] : memref<1x22x22xf32, #tpu.memory_space<vmem>>, vector<1x18x22xf32>
    %cst = arith.constant 0.402619958 : f32
    %1 = vector.broadcast %cst : f32 to vector<1x18x22xf32>
    %2 = arith.mulf %1, %0 : vector<1x18x22xf32>
    %c0_1 = arith.constant 0 : index
    %c1 = arith.constant 1 : index
    %c0_2 = arith.constant 0 : index
    %3 = vector.load %arg2[%c0_1, %c1, %c0_2] : memref<1x22x22xf32, #tpu.memory_space<vmem>>, vector<1x18x22xf32>
    %c0_3 = arith.constant 0 : index
    %c3 = arith.constant 3 : index
    %c0_4 = arith.constant 0 : index
    %4 = vector.load %arg2[%c0_3, %c3, %c0_4] : memref<1x22x22xf32, #tpu.memory_space<vmem>>, vector<1x18x22xf32>
    %5 = arith.addf %3, %4 : vector<1x18x22xf32>
    %cst_5 = arith.constant 0.244201347 : f32
    %6 = vector.broadcast %cst_5 : f32 to vector<1x18x22xf32>
    %7 = arith.mulf %6, %5 : vector<1x18x22xf32>
    %8 = arith.addf %2, %7 : vector<1x18x22xf32>
    %c0_6 = arith.constant 0 : index
    %c0_7 = arith.constant 0 : index
    %c0_8 = arith.constant 0 : index
    %9 = vector.load %arg2[%c0_6, %c0_7, %c0_8] : memref<1x22x22xf32, #tpu.memory_space<vmem>>, vector<1x18x22xf32>
    %c0_9 = arith.constant 0 : index
    %c4 = arith.constant 4 : index
    %c0_10 = arith.constant 0 : index
    %10 = vector.load %arg2[%c0_9, %c4, %c0_10] : memref<1x22x22xf32, #tpu.memory_space<vmem>>, vector<1x18x22xf32>
    %11 = arith.addf %9, %10 : vector<1x18x22xf32>
    %cst_11 = arith.constant 0.054488685 : f32
    %12 = vector.broadcast %cst_11 : f32 to vector<1x18x22xf32>
    %13 = arith.mulf %12, %11 : vector<1x18x22xf32>
    %14 = arith.addf %8, %13 : vector<1x18x22xf32>
    %c0_12 = arith.constant 0 : index
    %c0_13 = arith.constant 0 : index
    %c0_14 = arith.constant 0 : index
    %15 = vector.load %arg7[%c0_12, %c0_13, %c0_14] : memref<1x18x22xf32, #tpu.memory_space<vmem>>, vector<1x18x22xf32>
    tpu.vector_store %arg7[%c0_12, %c0_13, %c0_14], %14 {strides = array<i32>} : memref<1x18x22xf32, #tpu.memory_space<vmem>>, vector<1x18x22xf32>,
    %c0_15 = arith.constant 0 : index
    %c0_16 = arith.constant 0 : index
    %c2_17 = arith.constant 2 : index
    %16 = vector.load %arg7[%c0_15, %c0_16, %c2_17] : memref<1x18x22xf32, #tpu.memory_space<vmem>>, vector<1x18x18xf32>
    %cst_18 = arith.constant 0.402619958 : f32
    %17 = vector.broadcast %cst_18 : f32 to vector<1x18x18xf32>
    %18 = arith.mulf %17, %16 : vector<1x18x18xf32>
    %c0_19 = arith.constant 0 : index
    %c0_20 = arith.constant 0 : index
    %c1_21 = arith.constant 1 : index
    %19 = vector.load %arg7[%c0_19, %c0_20, %c1_21] : memref<1x18x22xf32, #tpu.memory_space<vmem>>, vector<1x18x18xf32>
    %c0_22 = arith.constant 0 : index
    %c0_23 = arith.constant 0 : index
    %c3_24 = arith.constant 3 : index
    %20 = vector.load %arg7[%c0_22, %c0_23, %c3_24] : memref<1x18x22xf32, #tpu.memory_space<vmem>>, vector<1x18x18xf32>
    %21 = arith.addf %19, %20 : vector<1x18x18xf32>
    %cst_25 = arith.constant 0.244201347 : f32
    %22 = vector.broadcast %cst_25 : f32 to vector<1x18x18xf32>
    %23 = arith.mulf %22, %21 : vector<1x18x18xf32>
    %24 = arith.addf %18, %23 : vector<1x18x18xf32>
    %c0_26 = arith.constant 0 : index
    %c0_27 = arith.constant 0 : index
    %c0_28 = arith.constant 0 : index
    %25 = vector.load %arg7[%c0_26, %c0_27, %c0_28] : memref<1x18x22xf32, #tpu.memory_space<vmem>>, vector<1x18x18xf32>
    %c0_29 = arith.constant 0 : index
    %c0_30 = arith.constant 0 : index
    %c4_31 = arith.constant 4 : index
    %26 = vector.load %arg7[%c0_29, %c0_30, %c4_31] : memref<1x18x22xf32, #tpu.memory_space<vmem>>, vector<1x18x18xf32>
    %27 = arith.addf %25, %26 : vector<1x18x18xf32>
    %cst_32 = arith.constant 0.054488685 : f32
    %28 = vector.broadcast %cst_32 : f32 to vector<1x18x18xf32>
    %29 = arith.mulf %28, %27 : vector<1x18x18xf32>
    %30 = arith.addf %24, %29 : vector<1x18x18xf32>
    %c0_33 = arith.constant 0 : index
    %c0_34 = arith.constant 0 : index
    %c0_35 = arith.constant 0 : index
    %31 = vector.load %arg6[%c0_33, %c0_34, %c0_35] : memref<1x18x18xf32, #tpu.memory_space<vmem>>, vector<1x18x18xf32>
    tpu.vector_store %arg6[%c0_33, %c0_34, %c0_35], %30 {strides = array<i32>} : memref<1x18x18xf32, #tpu.memory_space<vmem>>, vector<1x18x18xf32>,
    %cst_36 = arith.constant 0.000000e+00 : f32
    %32 = vector.broadcast %cst_36 : f32 to vector<1x1x18xf32>
    %cst_37 = arith.constant 0.000000e+00 : f32
    %33 = vector.broadcast %cst_37 : f32 to vector<1x18x1xf32>
    %c0_38 = arith.constant 0 : index
    %c0_39 = arith.constant 0 : index
    %c0_40 = arith.constant 0 : index
    %34 = vector.load %arg6[%c0_38, %c0_39, %c0_40] : memref<1x18x18xf32, #tpu.memory_space<vmem>>, vector<1x1x18xf32>
    tpu.vector_store %arg6[%c0_38, %c0_39, %c0_40], %32 {strides = array<i32>} : memref<1x18x18xf32, #tpu.memory_space<vmem>>, vector<1x1x18xf32>,
    %c0_41 = arith.constant 0 : index
    %c17 = arith.constant 17 : index
    %c0_42 = arith.constant 0 : index
    %35 = vector.load %arg6[%c0_41, %c17, %c0_42] : memref<1x18x18xf32, #tpu.memory_space<vmem>>, vector<1x1x18xf32>
    tpu.vector_store %arg6[%c0_41, %c17, %c0_42], %32 {strides = array<i32>} : memref<1x18x18xf32, #tpu.memory_space<vmem>>, vector<1x1x18xf32>,
    %c0_43 = arith.constant 0 : index
    %c0_44 = arith.constant 0 : index
    %c0_45 = arith.constant 0 : index
    %36 = vector.load %arg6[%c0_43, %c0_44, %c0_45] : memref<1x18x18xf32, #tpu.memory_space<vmem>>, vector<1x18x1xf32>
    tpu.vector_store %arg6[%c0_43, %c0_44, %c0_45], %33 {strides = array<i32>} : memref<1x18x18xf32, #tpu.memory_space<vmem>>, vector<1x18x1xf32>,
    %c0_46 = arith.constant 0 : index
    %c0_47 = arith.constant 0 : index
    %c17_48 = arith.constant 17 : index
    %37 = vector.load %arg6[%c0_46, %c0_47, %c17_48] : memref<1x18x18xf32, #tpu.memory_space<vmem>>, vector<1x18x1xf32>
    tpu.vector_store %arg6[%c0_46, %c0_47, %c17_48], %33 {strides = array<i32>} : memref<1x18x18xf32, #tpu.memory_space<vmem>>, vector<1x18x1xf32>,
    %c0_49 = arith.constant 0 : index
    %c0_50 = arith.constant 0 : index
    %c0_51 = arith.constant 0 : index
    %38 = vector.load %arg6[%c0_49, %c0_50, %c0_51] : memref<1x18x18xf32, #tpu.memory_space<vmem>>, vector<1x16x18xf32>
    %c0_52 = arith.constant 0 : index
    %c1_53 = arith.constant 1 : index
    %c0_54 = arith.constant 0 : index
    %39 = vector.load %arg6[%c0_52, %c1_53, %c0_54] : memref<1x18x18xf32, #tpu.memory_space<vmem>>, vector<1x16x18xf32>
    %c0_55 = arith.constant 0 : index
    %c2_56 = arith.constant 2 : index
    %c0_57 = arith.constant 0 : index
    %40 = vector.load %arg6[%c0_55, %c2_56, %c0_57] : memref<1x18x18xf32, #tpu.memory_space<vmem>>, vector<1x16x18xf32>
    %cst_58 = arith.constant 2.000000e+00 : f32
    %41 = vector.broadcast %cst_58 : f32 to vector<1x16x18xf32>
    %42 = arith.mulf %41, %39 : vector<1x16x18xf32>
    %43 = arith.addf %38, %42 : vector<1x16x18xf32>
    %44 = arith.addf %43, %40 : vector<1x16x18xf32>
    %c0_59 = arith.constant 0 : index
    %c0_60 = arith.constant 0 : index
    %c0_61 = arith.constant 0 : index
    %45 = vector.load %arg8[%c0_59, %c0_60, %c0_61] : memref<1x16x18xf32, #tpu.memory_space<vmem>>, vector<1x16x18xf32>
    tpu.vector_store %arg8[%c0_59, %c0_60, %c0_61], %44 {strides = array<i32>} : memref<1x16x18xf32, #tpu.memory_space<vmem>>, vector<1x16x18xf32>,
    %46 = arith.subf %40, %38 : vector<1x16x18xf32>
    %c0_62 = arith.constant 0 : index
    %c0_63 = arith.constant 0 : index
    %c0_64 = arith.constant 0 : index
    %47 = vector.load %arg9[%c0_62, %c0_63, %c0_64] : memref<1x16x18xf32, #tpu.memory_space<vmem>>, vector<1x16x18xf32>
    tpu.vector_store %arg9[%c0_62, %c0_63, %c0_64], %46 {strides = array<i32>} : memref<1x16x18xf32, #tpu.memory_space<vmem>>, vector<1x16x18xf32>,
    %c0_65 = arith.constant 0 : index
    %c0_66 = arith.constant 0 : index
    %c2_67 = arith.constant 2 : index
    %48 = vector.load %arg8[%c0_65, %c0_66, %c2_67] : memref<1x16x18xf32, #tpu.memory_space<vmem>>, vector<1x16x16xf32>
    %c0_68 = arith.constant 0 : index
    %c0_69 = arith.constant 0 : index
    %c0_70 = arith.constant 0 : index
    %49 = vector.load %arg8[%c0_68, %c0_69, %c0_70] : memref<1x16x18xf32, #tpu.memory_space<vmem>>, vector<1x16x16xf32>
    %50 = arith.subf %48, %49 : vector<1x16x16xf32>
    %c0_71 = arith.constant 0 : index
    %c0_72 = arith.constant 0 : index
    %c0_73 = arith.constant 0 : index
    %51 = vector.load %arg9[%c0_71, %c0_72, %c0_73] : memref<1x16x18xf32, #tpu.memory_space<vmem>>, vector<1x16x16xf32>
    %c0_74 = arith.constant 0 : index
    %c0_75 = arith.constant 0 : index
    %c1_76 = arith.constant 1 : index
    %52 = vector.load %arg9[%c0_74, %c0_75, %c1_76] : memref<1x16x18xf32, #tpu.memory_space<vmem>>, vector<1x16x16xf32>
    %cst_77 = arith.constant 2.000000e+00 : f32
    %53 = vector.broadcast %cst_77 : f32 to vector<1x16x16xf32>
    %54 = arith.mulf %53, %52 : vector<1x16x16xf32>
    %55 = arith.addf %51, %54 : vector<1x16x16xf32>
    %c0_78 = arith.constant 0 : index
    %c0_79 = arith.constant 0 : index
    %c2_80 = arith.constant 2 : index
    %56 = vector.load %arg9[%c0_78, %c0_79, %c2_80] : memref<1x16x18xf32, #tpu.memory_space<vmem>>, vector<1x16x16xf32>
    %57 = arith.addf %55, %56 : vector<1x16x16xf32>
    %58 = arith.mulf %50, %50 : vector<1x16x16xf32>
    %59 = arith.mulf %57, %57 : vector<1x16x16xf32>
    %60 = arith.addf %58, %59 : vector<1x16x16xf32>
    %c0_i32 = arith.constant 0 : i32
    %61 = arith.cmpi eq, %arg0, %c0_i32 : i32
    %62 = arith.extui %61 : i1 to i32
    %c0_i32_81 = arith.constant 0 : i32
    %63 = arith.cmpi ne, %62, %c0_i32_81 : i32
    scf.if %63 {
      %c0_i32_83 = arith.constant 0 : i32
      %67 = arith.cmpi eq, %arg1, %c0_i32_83 : i32
      %68 = arith.extui %67 : i1 to i32
      %c0_i32_84 = arith.constant 0 : i32
      %69 = arith.cmpi ne, %68, %c0_i32_84 : i32
      scf.if %69 {
        %cst_88 = arith.constant 0.000000e+00 : f32
        %c0_89 = arith.constant 0 : index
        %77 = memref.load %arg12[%c0_89] : memref<1xf32, #tpu.memory_space<smem>>
        memref.store %cst_88, %arg12[%c0_89] : memref<1xf32, #tpu.memory_space<smem>>
      } else {
      }
      %c0_85 = arith.constant 0 : index
      %70 = memref.load %arg12[%c0_85] : memref<1xf32, #tpu.memory_space<smem>>
      %71 = vector.shape_cast %60 : vector<1x16x16xf32> to vector<1x1x16x16xf32>
      %cst_86 = arith.constant dense<0xFF800000> : vector<1xf32>
      %72 = vector.multi_reduction <maximumf>, %71, %cst_86 [1, 2, 3] : vector<1x1x16x16xf32> to vector<1xf32>
      %73 = vector.shape_cast %72 : vector<1xf32> to vector<1x1x1x1xf32>
      %74 = vector.extract %73[0, 0, 0, 0] : f32 from vector<1x1x1x1xf32>
      %75 = arith.maximumf %70, %74 : f32
      %c0_87 = arith.constant 0 : index
      %76 = memref.load %arg12[%c0_87] : memref<1xf32, #tpu.memory_space<smem>>
      memref.store %75, %arg12[%c0_87] : memref<1xf32, #tpu.memory_space<smem>>
    } else {
    }
    %c1_i32 = arith.constant 1 : i32
    %64 = arith.cmpi eq, %arg0, %c1_i32 : i32
    %65 = arith.extui %64 : i1 to i32
    %c0_i32_82 = arith.constant 0 : i32
    %66 = arith.cmpi ne, %65, %c0_i32_82 : i32
    scf.if %66 {
      %c0_i32_83 = arith.constant 0 : i32
      %67 = arith.cmpi eq, %arg1, %c0_i32_83 : i32
      %68 = arith.extui %67 : i1 to i32
      %c0_i32_84 = arith.constant 0 : i32
      %69 = arith.cmpi ne, %68, %c0_i32_84 : i32
      scf.if %69 {
        %cst_117 = arith.constant 0.000000e+00 : f32
        %120 = vector.broadcast %cst_117 : f32 to vector<1x16x16xf32>
        %c0_118 = arith.constant 0 : index
        %c0_119 = arith.constant 0 : index
        %c0_120 = arith.constant 0 : index
        %121 = vector.load %arg10[%c0_118, %c0_119, %c0_120] : memref<1x16x16xf32, #tpu.memory_space<vmem>>, vector<1x16x16xf32>
        tpu.vector_store %arg10[%c0_118, %c0_119, %c0_120], %120 {strides = array<i32>} : memref<1x16x16xf32, #tpu.memory_space<vmem>>, vector<1x16x16xf32>,
        %cst_121 = arith.constant 0.000000e+00 : f32
        %122 = vector.broadcast %cst_121 : f32 to vector<1x16x16xf32>
        %c0_122 = arith.constant 0 : index
        %c0_123 = arith.constant 0 : index
        %c0_124 = arith.constant 0 : index
        %123 = vector.load %arg11[%c0_122, %c0_123, %c0_124] : memref<1x16x16xf32, #tpu.memory_space<vmem>>, vector<1x16x16xf32>
        tpu.vector_store %arg11[%c0_122, %c0_123, %c0_124], %122 {strides = array<i32>} : memref<1x16x16xf32, #tpu.memory_space<vmem>>, vector<1x16x16xf32>,
        %cst_125 = arith.constant 0.000000e+00 : f32
        %c0_126 = arith.constant 0 : index
        %124 = memref.load %arg13[%c0_126] : memref<1xf32, #tpu.memory_space<smem>>
        memref.store %cst_125, %arg13[%c0_126] : memref<1xf32, #tpu.memory_space<smem>>
      } else {
      }
      %c0_85 = arith.constant 0 : index
      %70 = memref.load %arg12[%c0_85] : memref<1xf32, #tpu.memory_space<smem>>
      %cst_86 = arith.constant 0.00999999977 : f32
      %71 = arith.mulf %cst_86, %70 : f32
      %72 = vector.broadcast %71 : f32 to vector<1x16x16xf32>
      %73 = arith.cmpf ogt, %60, %72 : vector<1x16x16xf32>
      %74 = arith.extui %73 : vector<1x16x16xi1> to vector<1x16x16xi32>
      %75 = arith.sitofp %74 : vector<1x16x16xi32> to vector<1x16x16xf32>
      %c0_87 = arith.constant 0 : index
      %c0_88 = arith.constant 0 : index
      %c0_89 = arith.constant 0 : index
      %76 = vector.load %arg10[%c0_87, %c0_88, %c0_89] : memref<1x16x16xf32, #tpu.memory_space<vmem>>, vector<1x16x16xf32>
      %77 = arith.addf %76, %75 : vector<1x16x16xf32>
      %c0_90 = arith.constant 0 : index
      %c0_91 = arith.constant 0 : index
      %c0_92 = arith.constant 0 : index
      %78 = vector.load %arg10[%c0_90, %c0_91, %c0_92] : memref<1x16x16xf32, #tpu.memory_space<vmem>>, vector<1x16x16xf32>
      tpu.vector_store %arg10[%c0_90, %c0_91, %c0_92], %77 {strides = array<i32>} : memref<1x16x16xf32, #tpu.memory_space<vmem>>, vector<1x16x16xf32>,
      %c0_93 = arith.constant 0 : index
      %c3_94 = arith.constant 3 : index
      %c3_95 = arith.constant 3 : index
      %79 = vector.load %arg2[%c0_93, %c3_94, %c3_95] : memref<1x22x22xf32, #tpu.memory_space<vmem>>, vector<1x16x16xf32>
      %c0_96 = arith.constant 0 : index
      %c0_97 = arith.constant 0 : index
      %c0_98 = arith.constant 0 : index
      %80 = vector.load %arg3[%c0_96, %c0_97, %c0_98] : memref<1x16x16xf32, #tpu.memory_space<vmem>>, vector<1x16x16xf32>
      %cst_99 = arith.constant 5.000000e-01 : f32
      %81 = vector.broadcast %cst_99 : f32 to vector<1x16x16xf32>
      %82 = arith.cmpf ogt, %79, %81 : vector<1x16x16xf32>
      %cst_100 = arith.constant 1.000000e+00 : f32
      %83 = vector.broadcast %cst_100 : f32 to vector<1x16x16xf32>
      %84 = arith.subf %83, %80 : vector<1x16x16xf32>
      %85 = arith.select %82, %80, %84 : vector<1x16x16xi1>, vector<1x16x16xf32>
      %cst_101 = arith.constant 9.99999997E-7 : f32
      %86 = vector.broadcast %cst_101 : f32 to vector<1x16x16xf32>
      %87 = arith.addf %85, %86 : vector<1x16x16xf32>
      %88 = math.log %87 : vector<1x16x16xf32>
      %cst_102 = arith.constant 0.000000e+00 : f32
      %89 = vector.broadcast %cst_102 : f32 to vector<1x16x16xf32>
      %90 = arith.subf %89, %88 : vector<1x16x16xf32>
      %c0_103 = arith.constant 0 : index
      %c0_104 = arith.constant 0 : index
      %c0_105 = arith.constant 0 : index
      %91 = vector.load %arg11[%c0_103, %c0_104, %c0_105] : memref<1x16x16xf32, #tpu.memory_space<vmem>>, vector<1x16x16xf32>
      %92 = arith.addf %91, %90 : vector<1x16x16xf32>
      %c0_106 = arith.constant 0 : index
      %c0_107 = arith.constant 0 : index
      %c0_108 = arith.constant 0 : index
      %93 = vector.load %arg11[%c0_106, %c0_107, %c0_108] : memref<1x16x16xf32, #tpu.memory_space<vmem>>, vector<1x16x16xf32>
      tpu.vector_store %arg11[%c0_106, %c0_107, %c0_108], %92 {strides = array<i32>} : memref<1x16x16xf32, #tpu.memory_space<vmem>>, vector<1x16x16xf32>,
      %cst_109 = arith.constant 5.000000e-01 : f32
      %94 = vector.broadcast %cst_109 : f32 to vector<1x16x16xf32>
      %95 = arith.cmpf ogt, %80, %94 : vector<1x16x16xf32>
      %96 = arith.extui %95 : vector<1x16x16xi1> to vector<1x16x16xi32>
      %97 = arith.sitofp %96 : vector<1x16x16xi32> to vector<1x16x16xf32>
      %98 = arith.mulf %79, %97 : vector<1x16x16xf32>
      %99 = vector.shape_cast %98 : vector<1x16x16xf32> to vector<1x1x16x16xf32>
      %cst_110 = arith.constant dense<0.000000e+00> : vector<1xf32>
      %100 = vector.multi_reduction <add>, %99, %cst_110 [1, 2, 3] : vector<1x1x16x16xf32> to vector<1xf32>
      %101 = vector.shape_cast %100 : vector<1xf32> to vector<1x1x1x1xf32>
      %102 = vector.extract %101[0, 0, 0, 0] : f32 from vector<1x1x1x1xf32>
      %103 = vector.shape_cast %79 : vector<1x16x16xf32> to vector<1x1x16x16xf32>
      %cst_111 = arith.constant dense<0.000000e+00> : vector<1xf32>
      %104 = vector.multi_reduction <add>, %103, %cst_111 [1, 2, 3] : vector<1x1x16x16xf32> to vector<1xf32>
      %105 = vector.shape_cast %104 : vector<1xf32> to vector<1x1x1x1xf32>
      %106 = vector.extract %105[0, 0, 0, 0] : f32 from vector<1x1x1x1xf32>
      %107 = vector.shape_cast %97 : vector<1x16x16xf32> to vector<1x1x16x16xf32>
      %cst_112 = arith.constant dense<0.000000e+00> : vector<1xf32>
      %108 = vector.multi_reduction <add>, %107, %cst_112 [1, 2, 3] : vector<1x1x16x16xf32> to vector<1xf32>
      %109 = vector.shape_cast %108 : vector<1xf32> to vector<1x1x1x1xf32>
      %110 = vector.extract %109[0, 0, 0, 0] : f32 from vector<1x1x1x1xf32>
      %111 = arith.addf %106, %110 : f32
      %112 = arith.subf %111, %102 : f32
      %c0_113 = arith.constant 0 : index
      %113 = memref.load %arg13[%c0_113] : memref<1xf32, #tpu.memory_space<smem>>
      %114 = arith.divf %102, %112 : f32
      %115 = arith.addf %113, %114 : f32
      %c0_114 = arith.constant 0 : index
      %116 = memref.load %arg13[%c0_114] : memref<1xf32, #tpu.memory_space<smem>>
      memref.store %115, %arg13[%c0_114] : memref<1xf32, #tpu.memory_space<smem>>
      %c1_i32_115 = arith.constant 1 : i32
      %117 = arith.cmpi eq, %arg1, %c1_i32_115 : i32
      %118 = arith.extui %117 : i1 to i32
      %c0_i32_116 = arith.constant 0 : i32
      %119 = arith.cmpi ne, %118, %c0_i32_116 : i32
      scf.if %119 {
        %c0_117 = arith.constant 0 : index
        %120 = memref.load %arg13[%c0_117] : memref<1xf32, #tpu.memory_space<smem>>
        %cst_118 = arith.constant 2.000000e+00 : f32
        %121 = arith.divf %120, %cst_118 : f32
        %cst_119 = arith.constant 2.000000e+00 : f32
        %122 = arith.mulf %cst_119, %121 : f32
        %cst_120 = arith.constant 1.000000e+00 : f32
        %123 = arith.addf %cst_120, %121 : f32
        %124 = arith.divf %122, %123 : f32
        %c0_121 = arith.constant 0 : index
        %c0_122 = arith.constant 0 : index
        %125 = memref.load %arg4[%c0_121, %c0_122] : memref<2x1xf32, #tpu.memory_space<smem>>
        %126 = arith.subf %125, %121 : f32
        %127 = math.absf %126 : f32
        %cst_123 = arith.constant 0.000000e+00 : f32
        %128 = arith.addf %cst_123, %127 : f32
        %c1_124 = arith.constant 1 : index
        %c0_125 = arith.constant 0 : index
        %129 = memref.load %arg4[%c1_124, %c0_125] : memref<2x1xf32, #tpu.memory_space<smem>>
        %130 = arith.subf %129, %121 : f32
        %131 = math.absf %130 : f32
        %132 = arith.addf %128, %131 : f32
        %cst_126 = arith.constant 2.000000e+00 : f32
        %133 = arith.divf %132, %cst_126 : f32
        %c0_127 = arith.constant 0 : index
        %c0_128 = arith.constant 0 : index
        %c0_129 = arith.constant 0 : index
        %134 = vector.load %arg10[%c0_127, %c0_128, %c0_129] : memref<1x16x16xf32, #tpu.memory_space<vmem>>, vector<1x16x16xf32>
        %cst_130 = arith.constant 2.000000e+00 : f32
        %135 = vector.broadcast %cst_130 : f32 to vector<1x16x16xf32>
        %136 = arith.mulf %135, %134 : vector<1x16x16xf32>
        %cst_131 = arith.constant 2.000000e+00 : f32
        %137 = vector.broadcast %cst_131 : f32 to vector<1x16x16xf32>
        %138 = arith.addf %137, %136 : vector<1x16x16xf32>
        %c0_132 = arith.constant 0 : index
        %c0_133 = arith.constant 0 : index
        %c0_134 = arith.constant 0 : index
        %139 = vector.load %arg11[%c0_132, %c0_133, %c0_134] : memref<1x16x16xf32, #tpu.memory_space<vmem>>, vector<1x16x16xf32>
        %140 = arith.mulf %138, %139 : vector<1x16x16xf32>
        %141 = vector.shape_cast %140 : vector<1x16x16xf32> to vector<1x1x16x16xf32>
        %cst_135 = arith.constant dense<0.000000e+00> : vector<1xf32>
        %142 = vector.multi_reduction <add>, %141, %cst_135 [1, 2, 3] : vector<1x1x16x16xf32> to vector<1xf32>
        %143 = vector.shape_cast %142 : vector<1xf32> to vector<1x1x1x1xf32>
        %144 = vector.extract %143[0, 0, 0, 0] : f32 from vector<1x1x1x1xf32>
        %cst_136 = arith.constant 9.765625E-4 : f32
        %145 = arith.mulf %144, %cst_136 : f32
        %cst_137 = arith.constant 1.000000e+00 : f32
        %146 = arith.subf %cst_137, %121 : f32
        %147 = arith.addf %133, %146 : f32
        %cst_138 = arith.constant 1.000000e+00 : f32
        %148 = arith.subf %cst_138, %124 : f32
        %149 = arith.addf %147, %148 : f32
        %cst_139 = arith.constant 5.000000e-02 : f32
        %150 = arith.mulf %149, %cst_139 : f32
        %151 = arith.addf %145, %150 : f32
        %c0_140 = arith.constant 0 : index
        %152 = memref.load %arg5[%c0_140] : memref<3xf32, #tpu.memory_space<smem>>
        memref.store %151, %arg5[%c0_140] : memref<3xf32, #tpu.memory_space<smem>>
        %c1_141 = arith.constant 1 : index
        %153 = memref.load %arg5[%c1_141] : memref<3xf32, #tpu.memory_space<smem>>
        memref.store %121, %arg5[%c1_141] : memref<3xf32, #tpu.memory_space<smem>>
        %c2_142 = arith.constant 2 : index
        %154 = memref.load %arg5[%c2_142] : memref<3xf32, #tpu.memory_space<smem>>
        memref.store %124, %arg5[%c2_142] : memref<3xf32, #tpu.memory_space<smem>>
      } else {
      }
    } else {
    }
    return
  }
  func.func @transform_0(%arg0: i32, %arg1: i32) -> (i32, i32, i32) {
    %c0_i32 = arith.constant 0 : i32
    %c0_i32_0 = arith.constant 0 : i32
    %c0_i32_1 = arith.constant 0 : i32
    return %arg1, %c0_i32, %c0_i32_0 : i32, i32, i32
  }
  func.func @transform_1(%arg0: i32, %arg1: i32) -> (i32, i32, i32) {
    %c0_i32 = arith.constant 0 : i32
    %c0_i32_0 = arith.constant 0 : i32
    %c0_i32_1 = arith.constant 0 : i32
    return %arg1, %c0_i32, %c0_i32_0 : i32, i32, i32
  }
  func.func @transform_2(%arg0: i32, %arg1: i32) -> (i32, i32) {
    %c0_i32 = arith.constant 0 : i32
    %c0_i32_0 = arith.constant 0 : i32
    %c0_i32_1 = arith.constant 0 : i32
    return %c0_i32, %c0_i32_0 : i32, i32
  }
  func.func @transform_3(%arg0: i32, %arg1: i32) -> i32 {
    %c0_i32 = arith.constant 0 : i32
    %c0_i32_0 = arith.constant 0 : i32
    return %c0_i32 : i32
  }
}

</mosaic_0001>

<bundles_post_ra>
// kernel: mixed_edge_weighted_loss.1
= control target key start
LH: loop header
LB: loop body
LE: loop exit
PB: predicated region body
PF: predicated region fallthrough
CT: control target
= control target key end

     0   :  { %8 = vsyncpa [#allocation11], 0  ;;  %s1204_s0 = inlined_call_operand.vmem [shape: f32[2,22,22], index: 0, kind: input, shape index: {}]   ;;  %s1205_s1 = inlined_call_operand.vmem [shape: f32[2,16,16], index: 1, kind: input, shape index: {}]   ;;  %s1206_s2 = inlined_call_operand.vmem [shape: f32[2,1], index: 2, kind: input, shape index: {}]   ;;  %s1207_s3 = inlined_call_operand.vmem [shape: f32[3], index: 3, kind: output, shape index: {}]  }
   0x1   :  { %9 = vsyncpa [#allocation12], 0  ;;  %s1033_s12 = smov 0   ;;  %s1035_s13 = smov 0  }
   0x2   :  { %s1037_s14 = smov 0   ;;  %s1039_s15 = smov 0  }
   0x3   :  { %s1041_s16 = smov 0  }
   0x4 LB: > { %s784_s17 = sadd.s32 4294967295, %s995_s16   ;;  %s24_s18 = sadd.s32 1, %s987_s14  ;;  %s995_s16 = sphi %s1041_s16, %s15_s16   ;;  %s991_s15 = sphi %s1039_s15, %s1211_s15   ;;  %s987_s14 = sphi %s1037_s14, %s1210_s14   ;;  %s983_s13 = sphi %s1035_s13, %s1209_s13   ;;  %s979_s12 = sphi %s1033_s12, %s1208_s12  }
   0x5   : > { %p25_p0 = scmp.ge.s32.totalorder %s24_s18, 2  ;;  %s27_s19 = sadd.s32 1, %s991_s15 }
   0x6   : > { %p785_p1 = scmp.ge.s32.totalorder %s995_s16, 1  ;;  %p126_p2 = scmp.lt.s32.totalorder %s995_s16, 5 }
   0x7   : > { %s1213_s18 = smov (%p25_p0, %s24_s18), 0  ;;  %s1215_s19 = smov (!%p25_p0, %s27_s19), %s991_s15 }
   0x8   : > { %p127_p3 = pnand %p785_p1, %p126_p2  ;;  %p29_p4 = scmp.ge.s32.totalorder %s1215_s19, 2 }
   0x9   : > { %p839_p5 = scmp.eq.s32.totalorder %s784_s17, 0  ;;  %s138_s22 = sshll.u32 %s1206_s2, 4  ;;  %s139_s22 = int_to_ptr.vmem [resolvable:$true] %s138_s22 }
   0xa   : > { %p835_p6 = pneg %p127_p3  ;;  %s1217_s19 = smov (%p29_p4, %s1215_s19), 0 }
   0xb   : > { %s997_s23 = smov [#allocation10]   ;;  %167 = sbr.rel (%p127_p3) target bundleno = 1592 (0x638), region = 32 }
   0xc   : > { %p836_p7 = pnand %p839_p5, %p835_p6 }
   0xe   : > { %838 = dma.vmem_to_smem (!%p836_p7), %s139_s22, 32, %s997_s23, [#allocation11]  }
  0x10   : > { %970 = dma.done.wait (%p839_p5), [#allocation11], 32  }
  0x11   : > { %972 = vsyncadd (%p839_p5), [#allocation11], 4294967264 }
  0x12   : > { %174 = sfence }
  0x13   : > { %p193_p8 = scmp.lt.s32.totalorder %s979_s12, 1  ;;  %vm239_vm0 = vcmask 179200   ;;  %vm242_vm1 = vcmask 173056   ;;  %s998_s6 = smov 126   ;;  %vm325_vm2 = vcmask 146432   ;;  %vm333_vm3 = vcmask 7168  }
  0x14   : > { %s999_s7 = smov 124   ;;  %s1000_s8 = smov 1   ;;  %vm338_vm4 = vcmask 146568   ;;  %vm330_vm5 = vcmask 139264   ;;  %vm328_vm6 = vcmask 140288   ;;  %vm336_vm7 = vcmask 1024  }
  0x15   : > { %s194_s24 = scalar_select %p193_p8, %s979_s12, 1  ;;  %vm341_vm8 = vcmask 140424  }
  0x16   : > { %s1001_s9 = smov 2   ;;  %s1003_s10 = smov 127  }
  0x17   : > { %s808_s25 = smul.u32 24, %s194_s24  ;;  %s807_s26 = sshll.u32 %s194_s24, 4 }
  0x18   : > { %s1078_s29 = scalar_lea.vmem %s1205_s1, %s807_s26  ;;  %p793_p9 = scmp.ne.s32.totalorder %s983_s13, 0 }
  0x19   : > { %s1083_s5 = scalar_lea.vmem %s1204_s0, %s808_s25  ;;  %p841_p10 = scmp.eq.s32.totalorder (!%p793_p9), %s979_s12, 0 }
  0x1a   : > { %v204_v0 = vld [vmem:[%s1083_s5 + $0xa] sm:$0xff]  ;;  %v203_v7 = vld [vmem:[%s1083_s5 + $0x2] sm:$0xff]  ;;  %v205_v16 = vld [vmem:[%s1083_s5 + $0x12] sm:$0x3]  ;;  %s1004_s11 = smov (!%p793_p9), 0.0  }
  0x1b   : > { %v210_v1 = vld [vmem:[%s1083_s5 + $0x9] sm:$0xff]  ;;  %v207_v3 = vmul.f32 0.40261996, %v204_v0  ;;  %v206_v9 = vmul.f32 0.40261996, %v203_v7  ;;  %v209_v10 = vld [vmem:[%s1083_s5 + $0x1] sm:$0xff] }
  0x1c   : > { %v213_v2 = vld [vmem:[%s1083_s5 + $0xb] sm:$0xff]  ;;  %v212_v11 = vld [vmem:[%s1083_s5 + $0x3] sm:$0xff]  ;;  %v214_v22 = vld [vmem:[%s1083_s5 + $0x13] sm:$0x3]  ;;  %v208_v25 = vmul.f32 0.40261996, %v205_v16 }
  0x1d   : > { %v216_v4 = vadd.f32 %v213_v2, %v210_v1  ;;  %v225_v5 = vld [vmem:[%s1083_s5 + $0x8] sm:$0xff]  ;;  %v224_v12 = vld [vmem:[%s1083_s5] sm:$0xff]  ;;  %v215_v14 = vadd.f32 %v212_v11, %v209_v10  ;;  %v211_v19 = vld [vmem:[%s1083_s5 + $0x11] sm:$0x3] }
  0x1e   : > { %v228_v6 = vld [vmem:[%s1083_s5 + $0xc] sm:$0xff]  ;;  %v227_v15 = vld [vmem:[%s1083_s5 + $0x4] sm:$0xff]  ;;  %v217_v26 = vadd.f32 %v214_v22, %v211_v19  ;;  %v229_v27 = vld [vmem:[%s1083_s5 + $0x14] sm:$0x3] }
  0x1f   : > { %v231_v8 = vadd.f32 %v228_v6, %v225_v5  ;;  %v219_v13 = vmul.f32 0.24420135, %v216_v4  ;;  %v230_v18 = vadd.f32 %v227_v15, %v224_v12  ;;  %v218_v21 = vmul.f32 0.24420135, %v215_v14  ;;  %v226_v23 = vld [vmem:[%s1083_s5 + $0x10] sm:$0x3] }
  0x20   : > { %v232_v30 = vadd.f32 %v229_v27, %v226_v23  ;;  %v220_v31 = vmul.f32 0.24420135, %v217_v26 }
  0x21   : > { %v234_v17 = vmul.f32 0.054488685, %v231_v8  ;;  %v222_v20 = vadd.f32 %v219_v13, %v207_v3  ;;  %v233_v24 = vmul.f32 0.054488685, %v230_v18  ;;  %v221_v29 = vadd.f32 %v218_v21, %v206_v9 }
  0x22   : > { %v235_v33 = vmul.f32 0.054488685, %v232_v30  ;;  %v223_v34 = vadd.f32 %v220_v31, %v208_v25  ;;  %v1002_v9 = vmov 0.0  }
  0x23   : > { %v237_v28 = vadd.f32 %v234_v17, %v222_v20  ;;  %v236_v32 = vadd.f32 %v233_v24, %v221_v29 }
  0x24   : > { %v238_v35 = vadd.f32 %v235_v33, %v223_v34 }
  0x25   : > { %241 = vst.msk [vmem:[#allocation3 + $0x8] sm:$0xff] %vm239_vm0, %v237_v28 }
  0x26   : > { %240 = vst.msk [vmem:[#allocation3] sm:$0xff] %vm239_vm0, %v236_v32 }
  0x27   : > { %243 = vst.msk [vmem:[#allocation3 + $0x10] sm:$0x3] %vm242_vm1, %v238_v35 }
  0x2c   : > { %v245_v36 = vld [vmem:[#allocation3 + $0x8] sm:$0xff] }
  0x2d   : > { %255 = vrot.lane.b32.xlu1 %v245_v36, %s998_s6  ;;  %v244_v37 = vld [vmem:[#allocation3] sm:$0xff]  ;;  %v248_v58 = vmul.f32 0.40261996, %v245_v36 }
  0x2e   : > { %253 = vrot.lane.b32.xlu0 %v244_v37, %s998_s6  ;;  %v246_v38 = vld [vmem:[#allocation3 + $0x10] sm:$0x3]  ;;  %v247_v63 = vmul.f32 0.40261996, %v244_v37 }
  0x2f   : > { %287 = vrot.lane.b32.xlu2 %v246_v38, %s999_s7  ;;  %v249_v4 = vmul.f32 0.40261996, %v246_v38 }
  0x35   : > { %283 = vrot.lane.b32.xlu1 %v244_v37, %s999_s7 }
  0x36   : > { %257 = vrot.lane.b32.xlu0 %v246_v38, %s998_s6 }
  0x37   : > { %285 = vrot.lane.b32.xlu2 %v245_v36, %s999_s7 }
  0x89   : > { %v288_v39 = vpop.permute.xlu2 %287 }
  0x8a   : > { %v294_v55 = vadd.f32 %v288_v39, %v246_v38 }
  0x8c   : > { %v297_v56 = vmul.f32 0.054488685, %v294_v55 }
  0x91   : > { %v286_v43 = vpop.permute.xlu2 %285 }
  0x92   : > { %v293_v47 = vadd.f32 %v286_v43, %v245_v36 }
  0x94   : > { %v296_v49 = vmul.f32 0.054488685, %v293_v47 }
  0x9f   : > { %v256_v40 = vpop.permute.xlu1 %255 }
  0xa0   : > { %v263_v41 = vadd.f32 %v256_v40, %v245_v36  ;;  %v254_v42 = vpop.permute.xlu0 %253 }
  0xa1   : > { %v262_v45 = vadd.f32 %v254_v42, %v244_v37 }
  0xa2   : > { %v266_v44 = vmul.f32 0.24420135, %v263_v41 }
  0xa3   : > { %v265_v46 = vmul.f32 0.24420135, %v262_v45 }
  0xa4   : > { %273 = vrot.lane.b32.xlu2 %v266_v44, %s1000_s8 }
  0xa5   : > { %271 = vrot.lane.b32.xlu0 %v265_v46, %s1000_s8 }
  0xa7   : > { %v284_v48 = vpop.permute.xlu1 %283 }
  0xa8   : > { %v292_v50 = vadd.f32 %v284_v48, %v244_v37  ;;  %v258_v51 = vpop.permute.xlu0 %257 }
  0xa9   : > { %v264_v53 = vadd.f32 %v258_v51, %v246_v38 }
  0xaa   : > { %v295_v52 = vmul.f32 0.054488685, %v292_v50 }
  0xab   : > { %v267_v54 = vmul.f32 0.24420135, %v264_v53 }
  0xac   : > { %303 = vrot.lane.b32.xlu2 %v296_v49, %s1001_s9 }
  0xad   : > { %301 = vrot.lane.b32.xlu0 %v295_v52, %s1001_s9  ;;  %275 = vrot.lane.b32.xlu1 %v267_v54, %s1000_s8 }
  0xb5   : > { %305 = vrot.lane.b32.xlu1 %v297_v56, %s1001_s9 }
  0xfe   : > { %v274_v57 = vpop.permute.xlu2 %273 }
  0xff   : > { %v281_v59 = vadd.f32 %v274_v57, %v248_v58 }
 0x106   : > { %v304_v60 = vpop.permute.xlu2 %303 }
 0x107   : > { %v311_v61 = vadd.f32 %v304_v60, %v281_v59 }
 0x109   : > { %318 = vrot.lane.b32.xlu2 %v311_v61, %s998_s6 }
 0x117   : > { %v272_v62 = vpop.permute.xlu0 %271 }
 0x118   : > { %v280_v0 = vadd.f32 %v272_v62, %v247_v63 }
 0x11f   : > { %v276_v1 = vpop.permute.xlu1 %275  ;;  %v302_v2 = vpop.permute.xlu0 %301 }
 0x120   : > { %v310_v3 = vadd.f32 %v302_v2, %v280_v0  ;;  %v282_v5 = vadd.f32 %v276_v1, %v249_v4 }
 0x122   : > { %316 = vrot.lane.b32.xlu0 %v310_v3, %s998_s6 }
 0x127   : > { %v306_v6 = vpop.permute.xlu1 %305 }
 0x128   : > { %v312_v7 = vadd.f32 %v306_v6, %v282_v5 }
 0x12a   : > { %320 = vrot.lane.b32.xlu1 %v312_v7, %s998_s6 }
 0x163   : > { %v319_v8 = vpop.permute.xlu2 %318 }
 0x164   : > { %327 = vst.msk [vmem:[#allocation2 + $0x8] sm:$0xff] %vm325_vm2, %v319_v8 }
 0x165   : > { %335 = vst.msk [vmem:[#allocation2 + $0x8] sm:$0xff] %vm333_vm3, %v1002_v9 }
 0x166   : > { %340 = vst.msk [vmem:[#allocation2 + $0x8] sm:$0xff] %vm338_vm4, %v1002_v9 }
 0x16d   : > { %v344_v15 = vld [vmem:[#allocation2 + $0x8] sm:$0xff] }
 0x194   : > { %v317_v10 = vpop.permute.xlu0 %316 }
 0x195   : > { %326 = vst.msk [vmem:[#allocation2] sm:$0xff] %vm325_vm2, %v317_v10 }
 0x196   : > { %331 = vst.msk [vmem:[#allocation2] sm:$0x1] %vm330_vm5, %v1002_v9 }
 0x197   : > { %334 = vst.msk [vmem:[#allocation2] sm:$0xff] %vm333_vm3, %v1002_v9 }
 0x198   : > { %339 = vst.msk [vmem:[#allocation2] sm:$0xff] %vm338_vm4, %v1002_v9 }
 0x19c   : > { %v321_v11 = vpop.permute.xlu1 %320 }
 0x19d   : > { %329 = vst.msk [vmem:[#allocation2 + $0x10] sm:$0x3] %vm328_vm6, %v321_v11 }
 0x19e   : > { %332 = vst.msk [vmem:[#allocation2 + $0x11] sm:$0x1] %vm330_vm5, %v1002_v9 }
 0x19f   : > { %v343_v12 = vld [vmem:[#allocation2] sm:$0xff]  ;;  %337 = vst.msk [vmem:[#allocation2 + $0x10] sm:$0x3] %vm336_vm7, %v1002_v9 }
 0x1a0   : > { %v347_v13 = vld [vmem:[#allocation2 + $0x2] sm:$0xff]  ;;  %342 = vst.msk [vmem:[#allocation2 + $0x10] sm:$0x3] %vm341_vm8, %v1002_v9 }
 0x1a1   : > { %v357_v14 = vsub.f32 %v347_v13, %v343_v12  ;;  %v345_v22 = vld [vmem:[#allocation2 + $0x1] sm:$0xff] }
 0x1a2   : > { %v349_v23 = vmul.f32 2.0, %v345_v22 }
 0x1a3   : > { %359 = vst.msk [vmem:[#allocation5] sm:$0xff] %vm325_vm2, %v357_v14 }
 0x1a4   : > { %v351_v24 = vadd.f32 %v349_v23, %v343_v12 }
 0x1a6   : > { %v353_v25 = vadd.f32 %v351_v24, %v347_v13 }
 0x1a7   : > { %v348_v16 = vld [vmem:[#allocation2 + $0xa] sm:$0xff] }
 0x1a8   : > { %v358_v17 = vsub.f32 %v348_v16, %v344_v15  ;;  %355 = vst.msk [vmem:[#allocation4] sm:$0xff] %vm325_vm2, %v353_v25  ;;  %v346_v27 = vld [vmem:[#allocation2 + $0x9] sm:$0xff] }
 0x1a9   : > { %v350_v28 = vmul.f32 2.0, %v346_v27 }
 0x1aa   : > { %v373_v18 = vld [vmem:[#allocation5] sm:$0xff]  ;;  %360 = vst.msk [vmem:[#allocation5 + $0x8] sm:$0xff] %vm325_vm2, %v358_v17 }
 0x1ab   : > { %v375_v19 = vmul.f32 2.0, %v373_v18  ;;  %389 = vrot.lane.b32.xlu2 %v373_v18, %s998_s6  ;;  %v352_v29 = vadd.f32 %v350_v28, %v344_v15 }
 0x1ad   : > { %379 = vrot.lane.b32.xlu0 %v375_v19, %s1003_s10  ;;  %v354_v30 = vadd.f32 %v352_v29, %v348_v16 }
 0x1af   : > { %v361_v26 = vld [vmem:[#allocation4] sm:$0xff]  ;;  %356 = vst.msk [vmem:[#allocation4 + $0x8] sm:$0xff] %vm325_vm2, %v354_v30 }
 0x1b1   : > { %v374_v20 = vld [vmem:[#allocation5 + $0x8] sm:$0xff] }
 0x1b2   : > { %v376_v21 = vmul.f32 2.0, %v374_v20 }
 0x1b4   : > { %381 = vrot.lane.b32.xlu1 %v376_v21, %s1003_s10 }
 0x1b5   : > { %391 = vrot.lane.b32.xlu0 %v374_v20, %s998_s6 }
 0x1b6   : > { %v362_v31 = vld [vmem:[#allocation4 + $0x8] sm:$0xff] }
 0x1b7   : > { %367 = vrot.lane.b32.xlu2 %v362_v31, %s1001_s9 }
 0x1bc   : > { %365 = vrot.lane.b32.xlu1 %v361_v26, %s1001_s9 }
 0x205   : > { %v390_v33 = vpop.permute.xlu2 %389 }
 0x211   : > { %v368_v45 = vpop.permute.xlu2 %367 }
 0x212   : > { %v372_v48 = vsub.f32 %v362_v31, %v368_v45 }
 0x214   : > { %v398_v49 = vmul.f32 %v372_v48, %v372_v48 }
 0x21f   : > { %v380_v32 = vpop.permute.xlu0 %379 }
 0x220   : > { %v385_v34 = vadd.f32 %v380_v32, %v373_v18 }
 0x222   : > { %v395_v35 = vadd.f32 %v390_v33, %v385_v34 }
 0x224   : > { %v399_v36 = vmul.f32 %v395_v35, %v395_v35 }
 0x226   : > { %403 = vrot.lane.b32.xlu0 %v399_v36, %s1001_s9  ;;  %v382_v37 = vpop.permute.xlu1 %381 }
 0x227   : > { %v392_v38 = vpop.permute.xlu0 %391  ;;  %v386_v39 = vadd.f32 %v382_v37, %v374_v20 }
 0x229   : > { %v396_v40 = vadd.f32 %v392_v38, %v386_v39 }
 0x22b   : > { %v400_v41 = vmul.f32 %v396_v40, %v396_v40 }
 0x22d   : > { %405 = vrot.lane.b32.xlu1 %v400_v41, %s1001_s9 }
 0x22e   : > { %v366_v42 = vpop.permute.xlu1 %365 }
 0x22f   : > { %v371_v43 = vsub.f32 %v361_v26, %v366_v42 }
 0x231   : > { %v397_v44 = vmul.f32 %v371_v43, %v371_v43 }
 0x298   : > { %v404_v46 = vpop.permute.xlu0 %403 }
 0x299   : > { %v1123_v47 = vadd.f32 %v404_v46, %v397_v44 }
 0x29c   : > { %414 = sbr.rel (%p793_p9) target bundleno = 857 (0x359), region = 40 }
 0x29f   : > { %v406_v50 = vpop.permute.xlu1 %405 }
 0x2a0   : > { %v1125_v51 = vadd.f32 %v406_v50, %v398_v49 }
 0x2a1   : > { %vm422_vm9 = vcmask 146448   ;;  %830 = sst [smem:[#allocation8]] (%p841_p10), %s1004_s11 }
 0x2a2   : > { %v423_v52 = vsel %vm422_vm9, %v1123_v47, -inf  ;;  %v424_v53 = vsel %vm422_vm9, %v1125_v51, -inf  ;;  %s421_s20 = sld [smem:[#allocation8]] }
 0x2a3   : > { %v425_v54 = vmax.f32 %v423_v52, %v424_v53 }
 0x2a5   : > { %426 = vmax.xlane.f32.xlu0 %v425_v54 }
 0x318   : > { %v427_v55 = vpop.xlane.xlu0 %426 }
 0x319   : > { %v428_v56 = vrot.slane %v427_v55, 4 }
 0x31b   : > { %v429_v57 = vmax.f32 %v427_v55, %v428_v56 }
 0x31d   : > { %v430_v58 = vrot.slane %v429_v57, 2 }
 0x31f   : > { %v431_v59 = vmax.f32 %v429_v57, %v430_v58 }
 0x321   : > { %v432_v60 = vrot.slane %v431_v59, 1 }
 0x323   : > { %v433_v61 = vmax.f32 %v431_v59, %v432_v60 }
 0x325   : > { %809 = vpush %v433_v61 }
 0x356   : > { %s810_s21 = spop %809 }
 0x357   : > { %s435_s22 = smax.f32 %s810_s21, %s421_s20 }
 0x358   : > { %437 = sst [smem:[#allocation8]] %s435_s22 }
 0x359 PF: > { %p795_p11 = scmp.ne.s32.totalorder %s983_s13, 1 }
 0x35a   : > { %p796_p12 = scmp.ne.s32.totalorder (!%p795_p11), %s979_s12, 0 }
 0x35b   : > { %441 = sbr.rel (%p795_p11) target bundleno = 1586 (0x632), region = 48 }
 0x360   : > { %445 = sbr.rel (%p796_p12) target bundleno = 874 (0x36a), region = 52  ;;  %s1006_s23 = smov (!%p796_p12), 0.0  }
 0x361   : > { %452 = sst [smem:[#allocation9]] (!%p796_p12), %s1006_s23 }
 0x365   : > { %vm446_vm10 = vcmask 130048   ;;  %v1005_v62 = vmov 0.0  }
 0x366   : > { %447 = vst.msk [vmem:[#allocation6] sm:$0xff] %vm446_vm10, %v1005_v62 }
 0x367   : > { %448 = vst.msk [vmem:[#allocation6 + $0x8] sm:$0xff] %vm446_vm10, %v1005_v62 }
 0x368   : > { %449 = vst.msk [vmem:[#allocation7] sm:$0xff] %vm446_vm10, %v1005_v62 }
 0x369   : > { %450 = vst.msk [vmem:[#allocation7 + $0x8] sm:$0xff] %vm446_vm10, %v1005_v62 }
 0x36a PF: > { %v479_v63 = vld [vmem:[%s1078_s29] sm:$0xff]  ;;  %v480_v0 = vld [vmem:[%s1078_s29 + $0x8] sm:$0xff]  ;;  %v1007_v1 = vmov 0.0   ;;  %s1008_s13 = smov 3   ;;  %s1009_s24 = smov 125   ;;  %vm474_vm13 = vcmask 130048  }
 0x36b   : > { %vm525_vm11 = vcmp.gt.f32.partialorder %v479_v63, 0.5  ;;  %vm526_vm12 = vcmp.gt.f32.partialorder %v480_v0, 0.5  ;;  %v1137_v5 = vld [vmem:[%s1083_s5 + $0xb] sm:$0xff]  ;;  %v477_v6 = vld [vmem:[%s1083_s5 + $0x3] sm:$0xff]  ;;  %v483_v15 = vsub.f32 1.0, %v479_v63  ;;  %v484_v26 = vsub.f32 1.0, %v480_v0 }
 0x36c   : > { %v799_v2 = vsel %vm525_vm11, 1.0, %v1007_v1  ;;  %v800_v3 = vsel %vm526_vm12, 1.0, %v1007_v1  ;;  %565 = vrot.lane.b32.xlu2 %v1137_v5, %s1009_s24  ;;  %s453_s25 = sld [smem:[#allocation8]]  ;;  %vm481_vm0 = vcmp.gt.f32.partialorder %v477_v6, 0.5  ;;  %s1010_s27 = smov 126   ;;  %vm482_vm1 = vcmp.gt.f32.partialorder %v1137_v5, 0.5 }
 0x36d   : > { %v900_v4 = vpack.i.bf16 %v800_v3, %v799_v2  ;;  %v581_v12 = vsel %vm474_vm13, %v799_v2, 0.0  ;;  %v582_v13 = vsel %vm474_vm13, %v800_v3, 0.0  ;;  %s595_s6 = sld [smem:[#allocation9]]  ;;  %p801_p13 = scmp.ne.s32.totalorder %s979_s12, 1 }
 0x36e   : > { %v583_v14 = vadd.f32 %v582_v13, %v581_v12 }
 0x36f   : > { %901 = vrot.lane.b32.xlu0 %v900_v4, %s1008_s13  ;;  %v511_v13 = vld [vmem:[#allocation7] sm:$0xff] }
 0x372   : > { %s454_s26 = smul.f32 0.01, %s453_s25 }
 0x374   : > { %v455_v33 = vstv %s454_s26 }
 0x375   : > { %vm456_vm14 = vcmp.gt.f32.partialorder %v1123_v47, %v455_v33  ;;  %vm457_vm15 = vcmp.gt.f32.partialorder %v1125_v51, %v455_v33 }
 0x376   : > { %v797_v37 = vsel %vm456_vm14, 1.0, %v1007_v1  ;;  %v798_v38 = vsel %vm457_vm15, 1.0, %v1007_v1 }
 0x377   : > { %v905_v40 = vpack.i.bf16 %v798_v38, %v797_v37 }
 0x3c6   : > { %v566_v21 = vpop.permute.xlu2 %565 }
 0x3c7   : > { %v570_v22 = vsel %vm474_vm13, %v566_v21, 0.0 }
 0x3e1   : > { %v902_v7 = vpop.permute.xlu0 %901 }
 0x3e2   : > { %v904_v8 = vunpack.i.h.bf16 %v902_v7  ;;  %v903_v9 = vunpack.i.l.bf16 %v902_v7 }
 0x3e4   : > { %v539_v10 = vmul.f32 %v903_v9, %v477_v6  ;;  %v540_v11 = vmul.f32 %v904_v8, %v1137_v5 }
 0x3e6   : > { %545 = vrot.lane.b32.xlu1 %v540_v11, %s1009_s24  ;;  %543 = vrot.lane.b32.xlu0 %v539_v10, %s1009_s24 }
 0x3ee   : > { %563 = vrot.lane.b32.xlu1 %v477_v6, %s1009_s24 }
 0x418   : > { %584 = vadd.xlane.f32.xlu1 %v583_v14 }
 0x431   : > { %495 = vrot.lane.b32.xlu1 %v483_v15, %s1008_s13 }
 0x458   : > { %v546_v16 = vpop.permute.xlu1 %545  ;;  %v544_v17 = vpop.permute.xlu0 %543 }
 0x459   : > { %v550_v18 = vsel %vm474_vm13, %v546_v16, 0.0  ;;  %v549_v19 = vsel %vm474_vm13, %v544_v17, 0.0  ;;  %v462_v16 = vld [vmem:[#allocation6] sm:$0xff]  ;;  %v463_v17 = vld [vmem:[#allocation6 + $0x8] sm:$0xff] }
 0x45a   : > { %v551_v20 = vadd.f32 %v550_v18, %v549_v19 }
 0x45c   : > { %552 = vadd.xlane.f32.xlu2 %v551_v20 }
 0x460   : > { %v564_v23 = vpop.permute.xlu1 %563 }
 0x461   : > { %v569_v24 = vsel %vm474_vm13, %v564_v23, 0.0  ;;  %v512_v23 = vld [vmem:[#allocation7 + $0x8] sm:$0xff] }
 0x462   : > { %v571_v25 = vadd.f32 %v570_v22, %v569_v24 }
 0x464   : > { %572 = vadd.xlane.f32.xlu0 %v571_v25 }
 0x474   : > { %487 = vrot.lane.b32.xlu2 %v479_v63, %s1008_s13 }
 0x478   : > { %489 = vrot.lane.b32.xlu0 %v480_v0, %s1008_s13 }
 0x47c   : > { %497 = vrot.lane.b32.xlu2 %v484_v26, %s1008_s13  ;;  %s649_s13 = sld [smem:[#allocation10]] (!%p801_p13) }
 0x480   : > { %906 = vrot.lane.b32.xlu0 %v905_v40, %s1010_s27 }
 0x48b   : > { %v585_v27 = vpop.xlane.xlu1 %584 }
 0x48c   : > { %v586_v28 = vrot.slane %v585_v27, 4 }
 0x48e   : > { %v587_v31 = vadd.f32 %v586_v28, %v585_v27 }
 0x490   : > { %v588_v35 = vrot.slane %v587_v31, 2 }
 0x492   : > { %v589_v48 = vadd.f32 %v588_v35, %v587_v31 }
 0x494   : > { %v590_v51 = vrot.slane %v589_v48, 1 }
 0x496   : > { %v591_v55 = vadd.f32 %v590_v51, %v589_v48 }
 0x4a3   : > { %v496_v36 = vpop.permute.xlu1 %495 }
 0x4cf   : > { %v553_v29 = vpop.xlane.xlu2 %552 }
 0x4d0   : > { %v554_v30 = vrot.slane %v553_v29, 4 }
 0x4d2   : > { %v555_v32 = vadd.f32 %v554_v30, %v553_v29 }
 0x4d4   : > { %v556_v34 = vrot.slane %v555_v32, 2 }
 0x4d6   : > { %v557_v39 = vadd.f32 %v556_v34, %v555_v32 }
 0x4d7   : > { %v573_v41 = vpop.xlane.xlu0 %572  ;;  %v488_v42 = vpop.permute.xlu2 %487 }
 0x4d8   : > { %v574_v43 = vrot.slane %v573_v41, 4  ;;  %v558_v44 = vrot.slane %v557_v39, 1  ;;  %v501_v45 = vsel %vm481_vm0, %v488_v42, %v496_v36 }
 0x4d9   : > { %v503_v46 = vadd.f32 1e-06, %v501_v45 }
 0x4da   : > { %v575_v49 = vadd.f32 %v574_v43, %v573_v41  ;;  %v559_v47 = vadd.f32 %v558_v44, %v557_v39 }
 0x4db   : > { %910 = vlog2.f32 %v503_v46 }
 0x4dc   : > { %v576_v50 = vrot.slane %v575_v49, 2  ;;  %811 = vpush %v559_v47 }
 0x4de   : > { %v577_v52 = vadd.f32 %v576_v50, %v575_v49 }
 0x4df   : > { %v498_v59 = vpop.permute.xlu2 %497 }
 0x4e0   : > { %v578_v53 = vrot.slane %v577_v52, 1 }
 0x4e1   : > { %v911_v54 = vpop.eup %910 }
 0x4e2   : > { %v506_v56 = vmul.f32 0.6931472, %v911_v54  ;;  %v579_v57 = vadd.f32 %v578_v53, %v577_v52 }
 0x4e4   : > { %813 = vpush %v579_v57  ;;  %v509_v58 = vsub.f32 0.0, %v506_v56 }
 0x4e5   : > { %815 = vpush %v591_v55 }
 0x4e6   : > { %515 = vrot.lane.b32.xlu2 %v509_v58, %s1009_s24 }
 0x4ea   : > { %v490_v60 = vpop.permute.xlu0 %489 }
 0x4eb   : > { %v502_v61 = vsel %vm482_vm1, %v490_v60, %v498_v59 }
 0x4ec   : > { %v504_v62 = vadd.f32 1e-06, %v502_v61 }
 0x4ee   : > { %912 = vlog2.f32 %v504_v62 }
 0x4f2   : > { %v907_v18 = vpop.permute.xlu0 %906 }
 0x4f3   : > { %v909_v19 = vunpack.i.h.bf16 %v907_v18  ;;  %v908_v20 = vunpack.i.l.bf16 %v907_v18 }
 0x4f4   : > { %v913_v63 = vpop.eup %912 }
 0x4f5   : > { %v508_v0 = vmul.f32 0.6931472, %v913_v63  ;;  %v473_v21 = vadd.f32 %v909_v19, %v463_v17  ;;  %v472_v22 = vadd.f32 %v908_v20, %v462_v16 }
 0x4f7   : > { %v510_v1 = vsub.f32 0.0, %v508_v0  ;;  %476 = vst.msk [vmem:[#allocation6 + $0x8] sm:$0xff] %vm474_vm13, %v473_v21 }
 0x4f8   : > { %475 = vst.msk [vmem:[#allocation6] sm:$0xff] %vm474_vm13, %v472_v22 }
 0x4f9   : > { %517 = vrot.lane.b32.xlu1 %v510_v1, %s1009_s24  ;;  %s802_s24 = sld [smem:[#allocation10 + $0x80]] (!%p801_p13) }
 0x50d   : > { %s1161_s28 = spop %811 }
 0x515   : > { %s814_s29 = spop %813 }
 0x516   : > { %s816_s30 = spop %815 }
 0x517   : > { %s593_s4 = sadd.f32 %s816_s30, %s814_s29 }
 0x519   : > { %s594_s5 = ssub.f32 %s593_s4, %s1161_s28 }
 0x51b   : > { %v596_v2 = vstv %s594_s5 }
 0x51c   : > { %914 = vrcp.f32 %v596_v2  ;;  %v608_v6 = vand.u32 2147483648, %v596_v2  ;;  %v606_v8 = vand.u32 2147483647, %v596_v2  ;;  %vm602_vm3 = vweird.f32 %v596_v2 }
 0x51e   : > { %v609_v10 = vor.u32 1.1754944e-38, %v608_v6  ;;  %vm607_vm5 = vcmp.eq.f32.partialorder %v606_v8, 8.507059e+37 }
 0x522   : > { %v915_v3 = vpop.eup %914 }
 0x523   : > { %v598_v4 = vmul.f32 %v915_v3, %v596_v2  ;;  %vm603_vm2 = vweird.f32 %v915_v3 }
 0x524   : > { %vm604_vm4 = vmor %vm602_vm3, %vm603_vm2 }
 0x525   : > { %v599_v5 = vsub.f32 1.0, %v598_v4 }
 0x527   : > { %v600_v7 = vmul.f32 %v915_v3, %v599_v5 }
 0x529   : > { %v601_v9 = vadd.f32 %v915_v3, %v600_v7 }
 0x52b   : > { %v605_v11 = vsel %vm604_vm4, %v915_v3, %v601_v9 }
 0x52c   : > { %v610_v12 = vsel %vm607_vm5, %v609_v10, %v605_v11 }
 0x52d   : > { %817 = vpush %v610_v12 }
 0x540   : > { %v516_v14 = vpop.permute.xlu2 %515 }
 0x541   : > { %v521_v15 = vadd.f32 %v516_v14, %v511_v13 }
 0x543   : > { %523 = vst.msk [vmem:[#allocation7] sm:$0xff] %vm474_vm13, %v521_v15 }
 0x55e   : > { %s818_s7 = spop %817 }
 0x55f   : > { %s612_s8 = smul.f32 %s818_s7, %s1161_s28 }
 0x561   : > { %s613_s9 = sadd.f32 %s612_s8, %s595_s6 }
 0x563   : > { %615 = sst [smem:[#allocation9]] %s613_s9 }
 0x564   : > { %s620_s12 = sld [smem:[#allocation9]] (!%p801_p13) }
 0x56a   : > { %619 = sbr.rel (%p801_p13) target bundleno = 1586 (0x632), region = 56 }
 0x56b   : > { %v518_v24 = vpop.permute.xlu1 %517 }
 0x56c   : > { %v522_v25 = vadd.f32 %v518_v24, %v512_v23 }
 0x56e   : > { %524 = vst.msk [vmem:[#allocation7 + $0x8] sm:$0xff] %vm474_vm13, %v522_v25 }
 0x56f   : > { %v666_v26 = vld [vmem:[#allocation6] sm:$0xff]  ;;  %v667_v27 = vld [vmem:[#allocation6 + $0x8] sm:$0xff]  ;;  %v1011_v30 = vmov 2.0   ;;  %v672_v31 = vld [vmem:[#allocation7] sm:$0xff] }
 0x570   : > { %v668_v28 = vmul.f32 2.0, %v666_v26  ;;  %v669_v29 = vmul.f32 2.0, %v667_v27  ;;  %916 = vrcp.f32 %v1011_v30 }
 0x572   : > { %v670_v33 = vadd.f32 2.0, %v668_v28  ;;  %v671_v34 = vadd.f32 2.0, %v669_v29 }
 0x574   : > { %v674_v35 = vmul.f32 %v672_v31, %v670_v33 }
 0x575   : > { %v673_v32 = vld [vmem:[#allocation7 + $0x8] sm:$0xff] }
 0x576   : > { %v675_v36 = vmul.f32 %v673_v32, %v671_v34  ;;  %v917_v37 = vpop.eup %916  ;;  %v676_v38 = vsel %vm474_vm13, %v674_v35, 0.0 }
 0x577   : > { %v622_v41 = vmul.f32 2.0, %v917_v37  ;;  %vm626_vm6 = vweird.f32 %v917_v37 }
 0x578   : > { %v677_v39 = vsel %vm474_vm13, %v675_v36, 0.0 }
 0x579   : > { %v678_v40 = vadd.f32 %v677_v39, %v676_v38  ;;  %v623_v42 = vsub.f32 1.0, %v622_v41 }
 0x57b   : > { %679 = vadd.xlane.f32.xlu0 %v678_v40  ;;  %v624_v43 = vmul.f32 %v917_v37, %v623_v42 }
 0x57d   : > { %v625_v44 = vadd.f32 %v917_v37, %v624_v43 }
 0x57f   : > { %v627_v45 = vsel %vm626_vm6, %v917_v37, %v625_v44 }
 0x580   : > { %819 = vpush %v627_v45 }
 0x5b1   : > { %s1172_s10 = spop %819 }
 0x5b2   : > { %s1175_s11 = smul.f32 %s1172_s10, %s620_s12 }
 0x5b4   : > { %698 = sst [smem:[#allocation13 + $0x1]] %s1175_s11  ;;  %s630_s21 = smul.f32 2.0, %s1175_s11 }
 0x5b5   : > { %s631_s20 = sadd.f32 1.0, %s1175_s11 }
 0x5b6   : > { %s650_s25 = ssub.f32 %s649_s13, %s1175_s11 }
 0x5b7   : > { %v632_v46 = vstv %s631_s20  ;;  %s654_s26 = ssub.f32 %s802_s24, %s1175_s11 }
 0x5b8   : > { %918 = vrcp.f32 %v632_v46  ;;  %v644_v47 = vand.u32 2147483648, %v632_v46  ;;  %vm638_vm7 = vweird.f32 %v632_v46  ;;  %v642_v51 = vand.u32 2147483647, %v632_v46  ;;  %s651_s27 = sand.u32 2147483647, %s650_s25  ;;  %s689_s4 = ssub.f32 1.0, %s1175_s11 }
 0x5b9   : > { %s655_s28 = sand.u32 2147483647, %s654_s26 }
 0x5ba   : > { %v645_v53 = vor.u32 1.1754944e-38, %v644_v47  ;;  %vm643_vm10 = vcmp.eq.f32.partialorder %v642_v51, 8.507059e+37  ;;  %s656_s29 = sadd.f32 %s655_s28, %s651_s27 }
 0x5bc   : > { %s665_s30 = smul.f32 %s1172_s10, %s656_s29 }
 0x5be   : > { %v919_v48 = vpop.eup %918  ;;  %s690_s6 = sadd.f32 %s689_s4, %s665_s30 }
 0x5bf   : > { %v634_v49 = vmul.f32 %v919_v48, %v632_v46  ;;  %vm639_vm8 = vweird.f32 %v919_v48 }
 0x5c0   : > { %vm640_vm9 = vmor %vm638_vm7, %vm639_vm8 }
 0x5c1   : > { %v635_v50 = vsub.f32 1.0, %v634_v49 }
 0x5c3   : > { %v636_v52 = vmul.f32 %v919_v48, %v635_v50 }
 0x5c5   : > { %v637_v54 = vadd.f32 %v919_v48, %v636_v52 }
 0x5c7   : > { %v641_v55 = vsel %vm640_vm9, %v919_v48, %v637_v54 }
 0x5c8   : > { %v646_v56 = vsel %vm643_vm10, %v645_v53, %v641_v55 }
 0x5c9   : > { %821 = vpush %v646_v56 }
 0x5ee   : > { %v680_v57 = vpop.xlane.xlu0 %679 }
 0x5ef   : > { %v681_v58 = vrot.slane %v680_v57, 4 }
 0x5f1   : > { %v682_v59 = vadd.f32 %v681_v58, %v680_v57 }
 0x5f3   : > { %v683_v60 = vrot.slane %v682_v59, 2 }
 0x5f5   : > { %v684_v61 = vadd.f32 %v683_v60, %v682_v59 }
 0x5f7   : > { %v685_v62 = vrot.slane %v684_v61, 1 }
 0x5f9   : > { %v686_v63 = vadd.f32 %v685_v62, %v684_v61 }
 0x5fa   : > { %s822_s22 = spop %821 }
 0x5fb   : > { %823 = vpush %v686_v63  ;;  %s648_s23 = smul.f32 %s822_s22, %s630_s21 }
 0x5fd   : > { %700 = sst [smem:[#allocation13 + $0x2]] %s648_s23 }
 0x5fe   : > { %s691_s5 = ssub.f32 1.0, %s648_s23 }
 0x600   : > { %s692_s7 = sadd.f32 %s691_s5, %s690_s6 }
 0x602   : > { %s693_s9 = smul.f32 0.05, %s692_s7 }
 0x62c   : > { %s824_s8 = spop %823 }
 0x62d   : > { %s688_s12 = smul.f32 0.0009765625, %s824_s8 }
 0x62f   : > { %s694_s20 = sadd.f32 %s693_s9, %s688_s12 }
 0x631   : > { %696 = sst [smem:[#allocation13]] %s694_s20 }
 0x632 PF: > { %p842_p0 = scmp.eq.s32.totalorder %s784_s17, 3  ;;  %s707_s13 = sshll.u32 %s1207_s3, 4  ;;  %s708_s13 = int_to_ptr.vmem [resolvable:$true] %s707_s13 }
 0x633   : > { %s1012_s10 = smov [#allocation13]  }
 0x634   : > { %832 = dma.smem_to_vmem (%p842_p0), %s1012_s10, 16, %s708_s13, [#allocation12]  }
 0x635   : > { %974 = dma.done.wait (%p842_p0), [#allocation12], 16  }
 0x636   : > { %976 = vsyncadd (%p842_p0), [#allocation12], 4294967280 }
 0x637   : > { %716 = sfence }
 0x638 PF: > { %s15_s16 = sadd.s32 1, %s995_s16   ;;  %s1208_s12 = smov %s987_s14 }
 0x639   : > { %p12_p1 = scmp.ge.s32.totalorder %s15_s16, 6   ;;  %s1209_s13 = smov %s991_s15 }
 0x63a   : > { %s1210_s14 = smov %s1213_s18  ;;  %s1211_s15 = smov %s1217_s19 }
 0x63b   :  { %14 = sbr.rel (!%p12_p1) target bundleno = 4 (0x4), region = 94 }
 0x640   :  { %722 = vsyncpa [#allocation11], 1 }
 0x641   :  { %724 = vsyncpa [#allocation11 + $0x1], 1 }
 0x642   :  { %725 = vsyncpa [#allocation12], 1 }
 0x643   :  { %727 = vsyncpa [#allocation12 + $0x1], 1 }

</bundles_post_ra>
